<compile_context>
chip_gen: v7x
topology: tpu7x:2x2x1
jax: 0.10.0
libtpu: 0.0.40
codegen_flags: <defaults>
</compile_context>

<pallas_src>
import jax
import jax.numpy as jnp
from jax import lax
from jax.experimental import pallas as pl
from jax.experimental.pallas import tpu as pltpu


# ---------------------------------------------------------------------------
# kernel
# ---------------------------------------------------------------------------
def _softplus(x):
    # Matches torch.nn.Softplus(beta=1, threshold=20): x for x > 20 else log1p(exp(x))
    return jnp.where(x > 20.0, x, jnp.log1p(jnp.exp(jnp.minimum(x, 20.0))))


def _make_heads_kernel(n_heads, bi, out_dim):
    """Fused kernel: per-view (Linear | Bilinear) + bias + Softplus, one output per head.

    Ref order: x refs (2H if bi else H), then H weight refs, H bias refs, H output refs.
    """
    n_x = 2 * n_heads if bi else n_heads

    def kernel(*refs):
        x_refs = refs[:n_x]
        w_refs = refs[n_x:n_x + n_heads]
        b_refs = refs[n_x + n_heads:n_x + 2 * n_heads]
        o_refs = refs[n_x + 2 * n_heads:]
        # Hoisted lane-index row, reused by every head/output class (no per-iter broadcast).
        lane = lax.broadcasted_iota(jnp.int32, (1, out_dim), 1)

        for v in range(n_heads):
            if bi:
                x1 = x_refs[2 * v][...]                     # (tn, d1)
                x2 = x_refs[2 * v + 1][...]                 # (tn, d2)
                d2 = x2.shape[-1]
                # t[:, o*d2 + j] = sum_i x1[:, i] * W[o, i, j]   (W reshaped at init)
                t = jnp.dot(x1, w_refs[v][...],
                            preferred_element_type=jnp.float32)  # (tn, out_dim*d2)
                # Blocked row-wise dot with x2: y[:, o] = sum_j t[:, o*d2+j] * x2[:, j]
                y = jnp.zeros((x1.shape[0], out_dim), jnp.float32)
                for o in range(out_dim):
                    col = jnp.sum(t[:, o * d2:(o + 1) * d2] * x2,
                                  axis=-1, keepdims=True)        # (tn, 1)
                    y = y + jnp.where(lane == o, col, 0.0)       # place into lane o
            else:
                y = jnp.dot(x_refs[v][...], w_refs[v][...],
                            preferred_element_type=jnp.float32)  # (tn, out_dim)
            y = y + b_refs[v][...]
            o_refs[v][...] = _softplus(y).astype(o_refs[v].dtype)

    return kernel


# ---------------------------------------------------------------------------
# wrapper
# ---------------------------------------------------------------------------
def _pick_batch_tile(n, row_bytes):
    # Double-buffered row tiles: keep 2*tn*row_bytes well under the 32 MiB scoped
    # VMEM default (and v7x's 64 MiB physical VMEM).  Cap at 1024 rows (v7x wants
    # big tiles to amortize per-step overhead).  The ragged last block is masked
    # by Pallas, so no batch padding is ever needed.
    budget = 8 << 20
    cap = max(8, min(1024, ((budget // max(row_bytes, 1)) // 8) * 8))
    # n <= cap: one full-extent block (legal for any n, even if n % 8 != 0).
    return n if n <= cap else cap


def fused_heads(xs, ws, bs, out_dim, bi):
    """All (n_views+1) heads in one pallas_call.

    xs: per-head inputs (flattened [x1_0, x2_0, x1_1, x2_1, ...] when bi=True)
    ws: per-head weights, pre-transposed / pre-reshaped at __init__
    bs: per-head biases, shape (1, out_dim)
    returns: tuple of (N, out_dim) evidences, one per head
    """
    n_heads = len(ws)
    n = xs[0].shape[0]
    assert all(x.shape[0] == n for x in xs)
    itemsize = xs[0].dtype.itemsize

    # Per-row VMEM footprint: inputs + outputs (+ the bilinear intermediate t).
    row_bytes = sum(int(x.shape[1]) * itemsize for x in xs)
    row_bytes += n_heads * out_dim * itemsize
    if bi:
        row_bytes += sum(out_dim * int(xs[2 * v + 1].shape[1]) * 4 for v in range(n_heads))
    tn = _pick_batch_tile(n, row_bytes)
    grid = (pl.cdiv(n, tn),)

    x_specs = [pl.BlockSpec((tn, int(x.shape[1])), lambda i: (i, 0)) for x in xs]
    # Weights / biases: constant index_map -> loaded once, resident across grid steps.
    w_specs = [pl.BlockSpec(tuple(int(s) for s in w.shape), lambda i: (0, 0)) for w in ws]
    b_specs = [pl.BlockSpec(tuple(int(s) for s in b.shape), lambda i: (0, 0)) for b in bs]
    out_shape = tuple(jax.ShapeDtypeStruct((n, out_dim), xs[0].dtype) for _ in range(n_heads))
    out_specs = [pl.BlockSpec((tn, out_dim), lambda i: (i, 0)) for _ in range(n_heads)]

    # Advisory cost estimate so XLA schedules neighbouring ops around the kernel.
    flops = 0
    for v, w in enumerate(ws):
        flops += 2 * n * int(w.shape[0]) * int(w.shape[1])
        if bi:
            flops += 2 * n * out_dim * int(xs[2 * v + 1].shape[1])
    transcendentals = 2 * n * n_heads * out_dim
    bytes_accessed = (sum(int(x.size) * itemsize for x in xs)
                      + sum(int(w.size) * 4 for w in ws)
                      + sum(int(b.size) * 4 for b in bs)
                      + n_heads * n * out_dim * itemsize)

    kernel = _make_heads_kernel(n_heads, bi, out_dim)
    return pl.pallas_call(
        kernel,
        out_shape=out_shape,
        grid=grid,
        in_specs=x_specs + w_specs + b_specs,
        out_specs=out_specs,
        compiler_params=pltpu.CompilerParams(
            # Batch tiles are independent -> shardable across v7x's TensorCores.
            dimension_semantics=("parallel",),
        ),
        cost_estimate=pl.CostEstimate(flops=int(flops),
                                      transcendentals=int(transcendentals),
                                      bytes_accessed=int(bytes_accessed)),
    )(*xs, *ws, *bs)


# ---------------------------------------------------------------------------
# ETrustNet
# ---------------------------------------------------------------------------
class Args:
    def __init__(self, n_views, n_classes):
        self.n_views = n_views
        self.n_classes = n_classes


class ETrustNet:
    """JAX/Pallas port of ETrustNet: one (Linear|Bilinear)+Softplus head per view
    plus one head for the `ps` (index n_views) input; returns a dict of evidences.
    All heads are evaluated in a single fused Pallas kernel per forward."""

    def __init__(self, args, in_dims, out_dim, bi=False, key=None):
        assert len(in_dims) == args.n_views + 1
        self.args = args
        self.n_views = args.n_views
        self.n_classes = args.n_classes
        self.bi = bi
        self.out_dim = out_dim
        self.in_dims = list(in_dims)

        key = jax.random.PRNGKey(42) if key is None else key
        self.params = []        # per-view (w, b) in torch layout (reference/export)
        self._w_kernel = []     # hoisted, kernel-ready weights (no per-step transposes)
        self._b_kernel = []
        for dims in in_dims:
            key, kw, kb = jax.random.split(key, 3)
            if bi:
                d1, d2 = dims
                bound = 1.0 / float(d1) ** 0.5
                w = jax.random.uniform(kw, (out_dim, d1, d2), jnp.float32, -bound, bound)
                b = jax.random.uniform(kb, (out_dim,), jnp.float32, -bound, bound)
                # W_resh[i, o*d2 + j] = W[o, i, j]
                w_k = jnp.transpose(w, (1, 0, 2)).reshape(d1, out_dim * d2)
            else:
                d = dims
                bound = 1.0 / float(d) ** 0.5
                w = jax.random.uniform(kw, (out_dim, d), jnp.float32, -bound, bound)
                b = jax.random.uniform(kb, (out_dim,), jnp.float32, -bound, bound)
                w_k = w.T                                  # (D, out_dim)
            self.params.append((w, b))
            self._w_kernel.append(w_k)
            self._b_kernel.append(b.reshape(1, out_dim))

    def __call__(self, inp):
        n_heads = self.n_views + 1
        if self.bi:
            xs = []
            for v in range(n_heads):
                x1, x2 = inp[v]
                xs.append(x1)
                xs.append(x2)
        else:
            xs = [inp[v] for v in range(n_heads)]
        outs = fused_heads(xs, self._w_kernel, self._b_kernel, self.out_dim, self.bi)
        return {v: outs[v] for v in range(n_heads)}


# ---------------------------------------------------------------------------
# pure-JAX reference (for correctness check only)
# ---------------------------------------------------------------------------
def _ref_linear(x, w, b):
    return _softplus(x @ w.T + b)


def _ref_bilinear(x1, x2, w, b):
    y = jnp.einsum("ni,oij,nj->no", x1, w, x2) + b
    return _softplus(y)


if __name__ == "__main__":
    key = jax.random.PRNGKey(0)

    batch = 8
    n_views = 2
    out_dim = 5
    args = Args(n_views=n_views, n_classes=out_dim)

    # ----- bi=False (Classifier heads) -----
    in_dims = [32, 16, 24]
    net = ETrustNet(args, in_dims, out_dim, bi=False)
    keys = jax.random.split(key, len(in_dims))
    inp = {v: jax.random.normal(keys[v], (batch, in_dims[v]), jnp.float32)
           for v in range(n_views + 1)}
    evidence = net(inp)
    for v in range(n_views + 1):
        jax.block_until_ready(evidence[v])
        w, b = net.params[v]
        ref = _ref_linear(inp[v], w, b)
        assert evidence[v].shape == (batch, out_dim)
        assert jnp.allclose(evidence[v], ref, atol=1e-5, rtol=1e-5), f"view {v} mismatch (bi=False)"

    # ----- bi=True (Feater / Bilinear heads), bilinear computed inside the kernel -----
    in_dims_bi = [(32, 16), (16, 8), (24, 12)]
    net_bi = ETrustNet(args, in_dims_bi, out_dim, bi=True)
    keys_bi = jax.random.split(jax.random.PRNGKey(1), 2 * len(in_dims_bi))
    inp_bi = {}
    for v in range(n_views + 1):
        d1, d2 = in_dims_bi[v]
        inp_bi[v] = (jax.random.normal(keys_bi[2 * v], (batch, d1), jnp.float32),
                     jax.random.normal(keys_bi[2 * v + 1], (batch, d2), jnp.float32))
    evidence_bi = net_bi(inp_bi)
    for v in range(n_views + 1):
        jax.block_until_ready(evidence_bi[v])
        w, b = net_bi.params[v]
        ref = _ref_bilinear(inp_bi[v][0], inp_bi[v][1], w, b)
        assert evidence_bi[v].shape == (batch, out_dim)
        assert jnp.allclose(evidence_bi[v], ref, atol=1e-4, rtol=1e-4), f"view {v} mismatch (bi=True)"

    # ----- larger batch exercises the multi-step grid + ragged (masked) last block -----
    big_batch = 1040   # tn=1024 -> 2 grid steps, second block is partial (no jnp.pad)
    kbig = jax.random.split(jax.random.PRNGKey(2), len(in_dims))
    inp_big = {v: jax.random.normal(kbig[v], (big_batch, in_dims[v]), jnp.float32)
               for v in range(n_views + 1)}
    evidence_big = net(inp_big)
    for v in range(n_views + 1):
        jax.block_until_ready(evidence_big[v])
        w, b = net.params[v]
        ref = _ref_linear(inp_big[v], w, b)
        assert evidence_big[v].shape == (big_batch, out_dim)
        assert jnp.allclose(evidence_big[v], ref, atol=1e-5, rtol=1e-5), f"view {v} mismatch (big batch)"

    print("KERNEL_OK")
</pallas_src>

<mosaic_0001>
module attributes {stable_mosaic.version = 11 : i64} {
  func.func @kernel(%arg0: i32, %arg1: memref<8x32xf32, #tpu.memory_space<vmem>>, %arg2: memref<8x16xf32, #tpu.memory_space<vmem>>, %arg3: memref<8x24xf32, #tpu.memory_space<vmem>>, %arg4: memref<32x5xf32, #tpu.memory_space<vmem>>, %arg5: memref<16x5xf32, #tpu.memory_space<vmem>>, %arg6: memref<24x5xf32, #tpu.memory_space<vmem>>, %arg7: memref<1x5xf32, #tpu.memory_space<vmem>>, %arg8: memref<1x5xf32, #tpu.memory_space<vmem>>, %arg9: memref<1x5xf32, #tpu.memory_space<vmem>>, %arg10: memref<8x5xf32, #tpu.memory_space<vmem>>, %arg11: memref<8x5xf32, #tpu.memory_space<vmem>>, %arg12: memref<8x5xf32, #tpu.memory_space<vmem>>) attributes {dimension_semantics = [#tpu.dimension_semantics<parallel>], iteration_bounds = array<i64: 1>, scalar_prefetch = 0 : i64, scratch_operands = 0 : i64, tpu.core_type = #tpu.core_type<tc>, window_params = [{transform_indices = @transform_0, window_bounds = array<i64: 8, 32>}, {transform_indices = @transform_1, window_bounds = array<i64: 8, 16>}, {transform_indices = @transform_2, window_bounds = array<i64: 8, 24>}, {pipeline_mode = #tpu.pipeline_mode<synchronous>, transform_indices = @transform_3, window_bounds = array<i64: 32, 5>}, {pipeline_mode = #tpu.pipeline_mode<synchronous>, transform_indices = @transform_4, window_bounds = array<i64: 16, 5>}, {pipeline_mode = #tpu.pipeline_mode<synchronous>, transform_indices = @transform_5, window_bounds = array<i64: 24, 5>}, {pipeline_mode = #tpu.pipeline_mode<synchronous>, transform_indices = @transform_6, window_bounds = array<i64: 1, 5>}, {pipeline_mode = #tpu.pipeline_mode<synchronous>, transform_indices = @transform_7, window_bounds = array<i64: 1, 5>}, {pipeline_mode = #tpu.pipeline_mode<synchronous>, transform_indices = @transform_8, window_bounds = array<i64: 1, 5>}, {transform_indices = @transform_9, window_bounds = array<i64: 8, 5>}, {transform_indices = @transform_10, window_bounds = array<i64: 8, 5>}, {transform_indices = @transform_11, window_bounds = array<i64: 8, 5>}]} {
    %c0 = arith.constant 0 : index
    %c0_0 = arith.constant 0 : index
    %0 = vector.load %arg1[%c0, %c0_0] : memref<8x32xf32, #tpu.memory_space<vmem>>, vector<8x32xf32>
    %c0_1 = arith.constant 0 : index
    %c0_2 = arith.constant 0 : index
    %1 = vector.load %arg4[%c0_1, %c0_2] : memref<32x5xf32, #tpu.memory_space<vmem>>, vector<32x5xf32>
    %cst = arith.constant dense<0.000000e+00> : vector<8x5xf32>
    %2 = tpu.matmul %0, %1, %cst {dimension_numbers = #tpu.dot_dimension_numbers<[1], [0], [0], [1], [0, 0, 1, 1], [], []>} : vector<8x32xf32>, vector<32x5xf32>, vector<8x5xf32> -> vector<8x5xf32>
    %c0_3 = arith.constant 0 : index
    %c0_4 = arith.constant 0 : index
    %3 = vector.load %arg7[%c0_3, %c0_4] : memref<1x5xf32, #tpu.memory_space<vmem>>, vector<1x5xf32>
    %4 = vector.broadcast %3 : vector<1x5xf32> to vector<8x5xf32>
    %5 = arith.addf %2, %4 : vector<8x5xf32>
    %cst_5 = arith.constant 2.000000e+01 : f32
    %6 = vector.broadcast %cst_5 : f32 to vector<8x5xf32>
    %7 = arith.cmpf ogt, %5, %6 : vector<8x5xf32>
    %cst_6 = arith.constant 2.000000e+01 : f32
    %8 = vector.broadcast %cst_6 : f32 to vector<8x5xf32>
    %9 = arith.minimumf %5, %8 : vector<8x5xf32>
    %10 = math.exp %9 : vector<8x5xf32>
    %11 = math.log1p %10 : vector<8x5xf32>
    %12 = arith.select %7, %5, %11 : vector<8x5xi1>, vector<8x5xf32>
    %c0_7 = arith.constant 0 : index
    %c0_8 = arith.constant 0 : index
    %13 = vector.load %arg10[%c0_7, %c0_8] : memref<8x5xf32, #tpu.memory_space<vmem>>, vector<8x5xf32>
    tpu.vector_store %arg10[%c0_7, %c0_8], %12 {strides = array<i32>} : memref<8x5xf32, #tpu.memory_space<vmem>>, vector<8x5xf32>,
    %c0_9 = arith.constant 0 : index
    %c0_10 = arith.constant 0 : index
    %14 = vector.load %arg2[%c0_9, %c0_10] : memref<8x16xf32, #tpu.memory_space<vmem>>, vector<8x16xf32>
    %c0_11 = arith.constant 0 : index
    %c0_12 = arith.constant 0 : index
    %15 = vector.load %arg5[%c0_11, %c0_12] : memref<16x5xf32, #tpu.memory_space<vmem>>, vector<16x5xf32>
    %cst_13 = arith.constant dense<0.000000e+00> : vector<8x5xf32>
    %16 = tpu.matmul %14, %15, %cst_13 {dimension_numbers = #tpu.dot_dimension_numbers<[1], [0], [0], [1], [0, 0, 1, 1], [], []>} : vector<8x16xf32>, vector<16x5xf32>, vector<8x5xf32> -> vector<8x5xf32>
    %c0_14 = arith.constant 0 : index
    %c0_15 = arith.constant 0 : index
    %17 = vector.load %arg8[%c0_14, %c0_15] : memref<1x5xf32, #tpu.memory_space<vmem>>, vector<1x5xf32>
    %18 = vector.broadcast %17 : vector<1x5xf32> to vector<8x5xf32>
    %19 = arith.addf %16, %18 : vector<8x5xf32>
    %cst_16 = arith.constant 2.000000e+01 : f32
    %20 = vector.broadcast %cst_16 : f32 to vector<8x5xf32>
    %21 = arith.cmpf ogt, %19, %20 : vector<8x5xf32>
    %cst_17 = arith.constant 2.000000e+01 : f32
    %22 = vector.broadcast %cst_17 : f32 to vector<8x5xf32>
    %23 = arith.minimumf %19, %22 : vector<8x5xf32>
    %24 = math.exp %23 : vector<8x5xf32>
    %25 = math.log1p %24 : vector<8x5xf32>
    %26 = arith.select %21, %19, %25 : vector<8x5xi1>, vector<8x5xf32>
    %c0_18 = arith.constant 0 : index
    %c0_19 = arith.constant 0 : index
    %27 = vector.load %arg11[%c0_18, %c0_19] : memref<8x5xf32, #tpu.memory_space<vmem>>, vector<8x5xf32>
    tpu.vector_store %arg11[%c0_18, %c0_19], %26 {strides = array<i32>} : memref<8x5xf32, #tpu.memory_space<vmem>>, vector<8x5xf32>,
    %c0_20 = arith.constant 0 : index
    %c0_21 = arith.constant 0 : index
    %28 = vector.load %arg3[%c0_20, %c0_21] : memref<8x24xf32, #tpu.memory_space<vmem>>, vector<8x24xf32>
    %c0_22 = arith.constant 0 : index
    %c0_23 = arith.constant 0 : index
    %29 = vector.load %arg6[%c0_22, %c0_23] : memref<24x5xf32, #tpu.memory_space<vmem>>, vector<24x5xf32>
    %cst_24 = arith.constant dense<0.000000e+00> : vector<8x5xf32>
    %30 = tpu.matmul %28, %29, %cst_24 {dimension_numbers = #tpu.dot_dimension_numbers<[1], [0], [0], [1], [0, 0, 1, 1], [], []>} : vector<8x24xf32>, vector<24x5xf32>, vector<8x5xf32> -> vector<8x5xf32>
    %c0_25 = arith.constant 0 : index
    %c0_26 = arith.constant 0 : index
    %31 = vector.load %arg9[%c0_25, %c0_26] : memref<1x5xf32, #tpu.memory_space<vmem>>, vector<1x5xf32>
    %32 = vector.broadcast %31 : vector<1x5xf32> to vector<8x5xf32>
    %33 = arith.addf %30, %32 : vector<8x5xf32>
    %cst_27 = arith.constant 2.000000e+01 : f32
    %34 = vector.broadcast %cst_27 : f32 to vector<8x5xf32>
    %35 = arith.cmpf ogt, %33, %34 : vector<8x5xf32>
    %cst_28 = arith.constant 2.000000e+01 : f32
    %36 = vector.broadcast %cst_28 : f32 to vector<8x5xf32>
    %37 = arith.minimumf %33, %36 : vector<8x5xf32>
    %38 = math.exp %37 : vector<8x5xf32>
    %39 = math.log1p %38 : vector<8x5xf32>
    %40 = arith.select %35, %33, %39 : vector<8x5xi1>, vector<8x5xf32>
    %c0_29 = arith.constant 0 : index
    %c0_30 = arith.constant 0 : index
    %41 = vector.load %arg12[%c0_29, %c0_30] : memref<8x5xf32, #tpu.memory_space<vmem>>, vector<8x5xf32>
    tpu.vector_store %arg12[%c0_29, %c0_30], %40 {strides = array<i32>} : memref<8x5xf32, #tpu.memory_space<vmem>>, vector<8x5xf32>,
    return
  }
  func.func @transform_0(%arg0: i32) -> (i32, i32) {
    %c0_i32 = arith.constant 0 : i32
    %c0_i32_0 = arith.constant 0 : i32
    return %arg0, %c0_i32 : i32, i32
  }
  func.func @transform_1(%arg0: i32) -> (i32, i32) {
    %c0_i32 = arith.constant 0 : i32
    %c0_i32_0 = arith.constant 0 : i32
    return %arg0, %c0_i32 : i32, i32
  }
  func.func @transform_2(%arg0: i32) -> (i32, i32) {
    %c0_i32 = arith.constant 0 : i32
    %c0_i32_0 = arith.constant 0 : i32
    return %arg0, %c0_i32 : i32, i32
  }
  func.func @transform_3(%arg0: i32) -> (i32, i32) {
    %c0_i32 = arith.constant 0 : i32
    %c0_i32_0 = arith.constant 0 : i32
    %c0_i32_1 = arith.constant 0 : i32
    return %c0_i32, %c0_i32_0 : i32, i32
  }
  func.func @transform_4(%arg0: i32) -> (i32, i32) {
    %c0_i32 = arith.constant 0 : i32
    %c0_i32_0 = arith.constant 0 : i32
    %c0_i32_1 = arith.constant 0 : i32
    return %c0_i32, %c0_i32_0 : i32, i32
  }
  func.func @transform_5(%arg0: i32) -> (i32, i32) {
    %c0_i32 = arith.constant 0 : i32
    %c0_i32_0 = arith.constant 0 : i32
    %c0_i32_1 = arith.constant 0 : i32
    return %c0_i32, %c0_i32_0 : i32, i32
  }
  func.func @transform_6(%arg0: i32) -> (i32, i32) {
    %c0_i32 = arith.constant 0 : i32
    %c0_i32_0 = arith.constant 0 : i32
    %c0_i32_1 = arith.constant 0 : i32
    return %c0_i32, %c0_i32_0 : i32, i32
  }
  func.func @transform_7(%arg0: i32) -> (i32, i32) {
    %c0_i32 = arith.constant 0 : i32
    %c0_i32_0 = arith.constant 0 : i32
    %c0_i32_1 = arith.constant 0 : i32
    return %c0_i32, %c0_i32_0 : i32, i32
  }
  func.func @transform_8(%arg0: i32) -> (i32, i32) {
    %c0_i32 = arith.constant 0 : i32
    %c0_i32_0 = arith.constant 0 : i32
    %c0_i32_1 = arith.constant 0 : i32
    return %c0_i32, %c0_i32_0 : i32, i32
  }
  func.func @transform_9(%arg0: i32) -> (i32, i32) {
    %c0_i32 = arith.constant 0 : i32
    %c0_i32_0 = arith.constant 0 : i32
    return %arg0, %c0_i32 : i32, i32
  }
  func.func @transform_10(%arg0: i32) -> (i32, i32) {
    %c0_i32 = arith.constant 0 : i32
    %c0_i32_0 = arith.constant 0 : i32
    return %arg0, %c0_i32 : i32, i32
  }
  func.func @transform_11(%arg0: i32) -> (i32, i32) {
    %c0_i32 = arith.constant 0 : i32
    %c0_i32_0 = arith.constant 0 : i32
    return %arg0, %c0_i32 : i32, i32
  }
}

</mosaic_0001>

<bundles_post_ra>
// kernel: tpu_custom_call.1
= control target key start
LH: loop header
LB: loop body
LE: loop exit
PB: predicated region body
PF: predicated region fallthrough
CT: control target
= control target key end

     0   :  { %17 = vsyncpa [#allocation3], 0  ;;  %v524_v3 = vmov 0.0|0.0   ;;  %vm525_vm0 = vmmov 0   ;;  %v526_v8 = vmov 0.0   ;;  %vm149_vm1 = vcmask 130048   ;;  %s713_s0 = inlined_call_operand.vmem [shape: f32[8,32], index: 0, kind: input, shape index: {}]   ;;  %s714_s1 = inlined_call_operand.vmem [shape: f32[8,16], index: 1, kind: input, shape index: {}]   ;;  %s715_s2 = inlined_call_operand.vmem [shape: f32[8,24], index: 2, kind: input, shape index: {}]   ;;  %s716_s3 = inlined_call_operand.vmem [shape: f32[32,5], index: 3, kind: input, shape index: {}]   ;;  %s717_s4 = inlined_call_operand.vmem [shape: f32[16,5], index: 4, kind: input, shape index: {}]   ;;  %s718_s5 = inlined_call_operand.vmem [shape: f32[24,5], index: 5, kind: input, shape index: {}]   ;;  %s719_s6 = inlined_call_operand.vmem [shape: f32[1,5], index: 6, kind: input, shape index: {}]   ;;  %s720_s7 = inlined_call_operand.vmem [shape: f32[1,5], index: 7, kind: input, shape index: {}]   ;;  %s721_s8 = inlined_call_operand.vmem [shape: f32[1,5], index: 8, kind: input, shape index: {}]   ;;  %s722_s9 = inlined_call_operand.hbm [shape: f32[8,5], index: 9, kind: output, shape index: {0}]   ;;  %s723_s10 = inlined_call_operand.hbm [shape: f32[8,5], index: 10, kind: output, shape index: {1}]   ;;  %s724_s11 = inlined_call_operand.hbm [shape: f32[8,5], index: 11, kind: output, shape index: {2}]  }
   0x1   :  { %v38_v0 = vld [vmem:[%s716_s3] sm:$0xff]  ;;  %v39_v1 = vld [vmem:[%s716_s3 + $0x8] sm:$0xff]  ;;  %424 = vmatprep.subr.bf16.mxu0 %v524_v3  ;;  %430 = vmatprep.subr.bf16.mxu1 %v524_v3  ;;  %v40_v6 = vld [vmem:[%s716_s3 + $0x10] sm:$0xff] }
   0x2   :  { %v140_v2 = vld [vmem:[%s717_s4] sm:$0xff]  ;;  %v425_v4 = vpack.c.bf16 %v39_v1, %v38_v0  ;;  %v141_v5 = vld [vmem:[%s717_s4 + $0x8] sm:$0xff]  ;;  %412 = vmatprep.mubr.msk.f32.mxu1 %vm525_vm0, %v526_v8  ;;  %v41_v9 = vld [vmem:[%s716_s3 + $0x18] sm:$0xff]  ;;  %405 = vmatprep.mubr.msk.f32.mxu0 %vm525_vm0, %v526_v8 }
   0x3   :  { %v431_v7 = vpack.c.bf16 %v141_v5, %v140_v2  ;;  %v239_v10 = vld [vmem:[%s718_s5] sm:$0xff]  ;;  %v240_v11 = vld [vmem:[%s718_s5 + $0x8] sm:$0xff]  ;;  %v428_v12 = vpack.c.bf16 %v41_v9, %v40_v6 }
   0x4   :  { %426 = vmatpush3.bf16.msra.mxu0 %v425_v4  ;;  %v139_v13 = vld [vmem:[%s714_s1] sm:$0xff]  ;;  %v434_v14 = vpack.c.bf16 %v240_v11, %v239_v10 }
   0x5   :  { %432 = vmatpush3.bf16.msra.mxu1 %v431_v7  ;;  %427 = vmatprep.subr.bf16.mxu0 %v524_v3 }
   0x6   :  { %18 = vsyncpa [#allocation5], 0  ;;  %433 = vmatprep.subr.bf16.mxu1 %v524_v3  ;;  %v37_v15 = vld [vmem:[%s713_s0] sm:$0xff]  ;;  %vm49_vm2 = vcmask 261120   ;;  %v241_v16 = vld [vmem:[%s718_s5 + $0x10] sm:$0xff]  ;;  %vm249_vm3 = vcmask 195584  }
   0x7   :  { %v238_v17 = vld [vmem:[%s715_s2] sm:$0xff]  ;;  %vm137_vm4 = vcmask 39936   ;;  %s529_s23 = smov [#allocation6]  }
   0x8   :  { %413 = vmatmul.mubr.msk.f32.vlgmr.msra.gmra.mrb[0].mxu1 %vm149_vm1, %v139_v13  ;;  %429 = vmatpush3.bf16.msra.mxu0 %v428_v12  ;;  %v381_v18 = vld [vmem:[%s720_s7] ss:$0 sm:$0xff]  ;;  %s364_s24 = sshll.u32 %s529_s23, 4  ;;  %s672_s24 = int_to_ptr.vmem [resolvable:$true] %s364_s24 }
   0x9   :  { %435 = vmatpush3.bf16.msra.mxu1 %v434_v14  ;;  %421 = vmatprep.mubr.msk.f32.mxu1 %vm525_vm0, %v526_v8  ;;  %v379_v22 = vld [vmem:[%s719_s6] ss:$0 sm:$0xff]  ;;  %s527_s6 = smov [#allocation4]  }
   0xa   :  { %419 = vmatprep.subr.mxu1 %v526_v8  ;;  %v383_v26 = vld [vmem:[%s721_s8] ss:$0 sm:$0xff]  ;;  %s354_s7 = sshll.u32 %s527_s6, 4  ;;  %s528_s8 = smov [#allocation2]   ;;  %s355_s7 = int_to_ptr.vmem [resolvable:$true] %s354_s7 }
   0xb   :  { %406 = vmatmul.mubr.msk.f32.vlgmr.msra.gmra.mrb[0].mxu0 %vm49_vm2, %v37_v15  ;;  %s344_s22 = sshll.u32 %s528_s8, 4  ;;  %s454_s25 = scalar_lea.vmem %s355_s7, 128  ;;  %s649_s22 = int_to_ptr.vmem [resolvable:$true] %s344_s22 }
   0xc   :  { %p455_p0 = scmp.ne.s32.totalorder %s355_s7, %s454_s25  ;;  %p459_p1 = scmp.lt.s32.totalorder %s355_s7, %s355_s7 }
   0xd   :  { %420 = vmatpush3.msra.mxu1 %v241_v16  ;;  %p460_p2 = scmp.lt.s32.totalorder %s454_s25, %s454_s25 }
   0xe   :  { %422 = vmatmul.mubr.msk.f32.vlgmr.msra.gmra.mrb[2].mxu1 %vm249_vm3, %v238_v17 }
   0xf   :  { %p461_p3 = por %p460_p2, %p459_p1 }
  0x11   :  { %p462_p4 = pnand %p461_p3, %p455_p0 }
  0xdb   :  { %v219_v19 = vpop.f32.mrb[0].mxu1 }
  0xdc   :  { %v220_v20 = vadd.f32 %v381_v18, %v219_v19  ;;  %v414_v21 = vpop.f32.mrb[1].mxu1 }
  0xde   :  { %v224_v23 = vmin.f32 %v220_v20, 20.0  ;;  %v119_v24 = vpop.f32.mrb[0].mxu0  ;;  %vm223_vm6 = vcmp.gt.f32.partialorder %v220_v20, 20.0 }
  0xdf   :  { %v635_v25 = vadd.f32 %v379_v22, %v119_v24  ;;  %v407_v27 = vpop.f32.mrb[1].mxu0 }
  0xe0   :  { %v225_v28 = vmul.f32 1.442695, %v224_v23 }
  0xe1   :  { %v124_v29 = vmin.f32 %v635_v25, 20.0  ;;  %v319_v30 = vpop.f32.mrb[2].mxu1 }
  0xe2   :  { %442 = vpow2.f32 %v225_v28  ;;  %v641_v31 = vadd.f32 %v383_v26, %v319_v30  ;;  %v423_v32 = vpop.f32.mrb[3].mxu1 }
  0xe3   :  { %v125_v33 = vmul.f32 1.442695, %v124_v29 }
  0xe4   :  { %v324_v34 = vmin.f32 %v641_v31, 20.0 }
  0xe5   :  { %444 = vpow2.f32 %v125_v33 }
  0xe6   :  { %v325_v35 = vmul.f32 1.442695, %v324_v34 }
  0xe8   :  { %446 = vpow2.f32 %v325_v35 }
  0xec   :  { %v443_v36 = vpop.eup %442 }
  0xed   :  { %v227_v37 = vadd.f32 1.0, %v443_v36  ;;  %v230_v41 = vmul.f32 -0.5, %v443_v36  ;;  %v233_v45 = vand.u32 2147483647, %v443_v36 }
  0xef   :  { %v445_v38 = vpop.eup %444  ;;  %448 = vlog2.f32 %v227_v37  ;;  %v231_v44 = vadd.f32 1.0, %v230_v41  ;;  %vm234_vm5 = vcmp.lt.f32.partialorder %v233_v45, 0.0004427343 }
  0xf0   :  { %v127_v39 = vadd.f32 1.0, %v445_v38  ;;  %v130_v43 = vmul.f32 -0.5, %v445_v38  ;;  %v133_v51 = vand.u32 2147483647, %v445_v38 }
  0xf1   :  { %v232_v50 = vmul.f32 %v443_v36, %v231_v44 }
  0xf2   :  { %v447_v40 = vpop.eup %446  ;;  %450 = vlog2.f32 %v127_v39  ;;  %v131_v48 = vadd.f32 1.0, %v130_v43  ;;  %vm645_vm7 = vcmp.lt.f32.partialorder %v133_v51, 0.0004427343 }
  0xf3   :  { %v327_v42 = vadd.f32 1.0, %v447_v40  ;;  %v330_v46 = vmul.f32 -0.5, %v447_v40  ;;  %v333_v58 = vand.u32 2147483647, %v447_v40 }
  0xf4   :  { %v132_v57 = vmul.f32 %v445_v38, %v131_v48 }
  0xf5   :  { %452 = vlog2.f32 %v327_v42  ;;  %v331_v54 = vadd.f32 1.0, %v330_v46 }
  0xf9   :  { %v449_v47 = vpop.eup %448 }
  0xfa   :  { %v229_v49 = vmul.f32 0.6931472, %v449_v47 }
  0xfc   :  { %v451_v52 = vpop.eup %450  ;;  %v235_v53 = vsel %vm234_vm5, %v232_v50, %v229_v49 }
  0xfd   :  { %v236_v55 = vsel %vm223_vm6, %v220_v20, %v235_v53  ;;  %v129_v56 = vmul.f32 0.6931472, %v451_v52 }
  0xfe   :  { %237 = vst.msk [vmem:[#allocation4] sm:$0xff] %vm137_vm4, %v236_v55 }
  0xff   :  { %v453_v60 = vpop.eup %452 }
 0x100   :  { %465 = shalt.err (!%p462_p4)
}
 0x101   :  { %s466_s28 = scalar_lea.hbm %s723_s10, 128 }
 0x102   :  { %p467_p5 = scmp.ne.s32.totalorder %s723_s10, %s466_s28  ;;  %p470_p6 = scmp.lt.u32.totalorder %s466_s28, %s723_s10 }
 0x104   :  { %p472_p7 = pnand %p470_p6, %p467_p5 }
 0x106   :  { %475 = shalt.err (!%p472_p7)
}
 0x107   :  { %357 = dma.vmem_to_hbm [thread:$0]  %s355_s7, 128, %s723_s10, [#allocation5]   ;;  %vm123_vm8 = vcmp.gt.f32.partialorder %v635_v25, 20.0  ;;  %v135_v61 = vsel %vm645_vm7, %v132_v57, %v129_v56  ;;  %v329_v63 = vmul.f32 0.6931472, %v453_v60  ;;  %v332_v0 = vmul.f32 %v447_v40, %v331_v54 }
 0x108   :  { %v136_v62 = vsel %vm123_vm8, %v635_v25, %v135_v61  ;;  %vm668_vm9 = vcmp.lt.f32.partialorder %v333_v58, 0.0004427343  ;;  %s476_s3 = scalar_lea.vmem %s649_s22, 128  ;;  %p481_p9 = scmp.lt.s32.totalorder %s649_s22, %s649_s22 }
 0x109   :  { %138 = vst.msk [vmem:[#allocation2] sm:$0xff] %vm137_vm4, %v136_v62  ;;  %p477_p8 = scmp.ne.s32.totalorder %s649_s22, %s476_s3  ;;  %p482_p10 = scmp.lt.s32.totalorder %s476_s3, %s476_s3 }
 0x10b   :  { %p483_p11 = por %p482_p10, %p481_p9 }
 0x10d   :  { %p484_p12 = pnand %p483_p11, %p477_p8 }
 0x10f   :  { %487 = shalt.err (!%p484_p12)
}
 0x110   :  { %s488_s16 = scalar_lea.hbm %s722_s9, 128 }
 0x111   :  { %p489_p13 = scmp.ne.s32.totalorder %s722_s9, %s488_s16  ;;  %p492_p0 = scmp.lt.u32.totalorder %s488_s16, %s722_s9 }
 0x113   :  { %p494_p1 = pnand %p492_p0, %p489_p13 }
 0x115   :  { %497 = shalt.err (!%p494_p1)
}
 0x116   :  { %347 = dma.vmem_to_hbm [thread:$0]  %s649_s22, 128, %s722_s9, [#allocation3]   ;;  %vm323_vm10 = vcmp.gt.f32.partialorder %v641_v31, 20.0  ;;  %v335_v2 = vsel %vm668_vm9, %v332_v0, %v329_v63 }
 0x117   :  { %v336_v3 = vsel %vm323_vm10, %v641_v31, %v335_v2  ;;  %s498_s21 = scalar_lea.vmem %s672_s24, 128  ;;  %p503_p3 = scmp.lt.s32.totalorder %s672_s24, %s672_s24 }
 0x118   :  { %337 = vst.msk [vmem:[#allocation6] sm:$0xff] %vm137_vm4, %v336_v3  ;;  %p499_p2 = scmp.ne.s32.totalorder %s672_s24, %s498_s21  ;;  %p504_p4 = scmp.lt.s32.totalorder %s498_s21, %s498_s21 }
 0x11a   :  { %p505_p5 = por %p504_p4, %p503_p3 }
 0x11c   :  { %p506_p6 = pnand %p505_p5, %p499_p2 }
 0x11e   :  { %509 = shalt.err (!%p506_p6)
}
 0x11f   :  { %s510_s9 = scalar_lea.hbm %s724_s11, 128 }
 0x120   :  { %p511_p7 = scmp.ne.s32.totalorder %s724_s11, %s510_s9  ;;  %p514_p8 = scmp.lt.u32.totalorder %s510_s9, %s724_s11 }
 0x122   :  { %p516_p9 = pnand %p514_p8, %p511_p7 }
 0x124   :  { %519 = shalt.err (!%p516_p9)
}
 0x125   :  { %367 = dma.vmem_to_hbm [thread:$0]  %s672_s24, 128, %s724_s11, [#allocation5]  }
 0x126   :  { %520 = dma.done.wait [#allocation3], 128  }
 0x127   :  { %521 = vsyncadd [#allocation3], 4294967168 }
 0x128   :  { %522 = dma.done.wait [#allocation5], 256  }
 0x129   :  { %523 = vsyncadd [#allocation5], 4294967040 }
 0x12a   :  { %377 = vsyncpa [#allocation3], 1 }
 0x12b   :  { %378 = vsyncpa [#allocation5], 1 }

</bundles_post_ra>
